<compile_context>
chip_gen: v7x
topology: tpu7x:2x2x1
jax: 0.10.0
libtpu: 0.0.40
codegen_flags: <defaults>
</compile_context>

<pallas_src>
import jax
import jax.numpy as jnp
from jax.experimental import pallas as pl
from jax.experimental.pallas import tpu as pltpu

LANE = 128     # TPU lane width (last dim must be lane-dense)
SUBLANE = 8    # TPU sublane width (second-last dim granularity)


def _round_up(n, m):
    return ((n + m - 1) // m) * m


def _vmem_capacity_bytes():
    """Generation-aware VMEM capacity (v5e/v6e: 128 MiB, v7x: 64 MiB)."""
    try:
        return int(pltpu.get_tpu_info().vmem_capacity_bytes)
    except Exception:
        return 64 << 20  # conservative default (v7x per-TC VMEM)


def _resident_vmem_bytes(tm, d_pad, h_pad):
    """VMEM working set of the resident-weights path for one row tile."""
    return (2 * tm * d_pad * 4        # x tile (f32, double-buffered)
            + 2 * tm * d_pad * 4      # out tile (double-buffered)
            + d_pad * h_pad * 2       # W1 (bf16, single-buffered / resident)
            + h_pad * d_pad * 2       # W2 (bf16, resident)
            + h_pad * 4 + d_pad * 4   # biases
            + tm * h_pad * 4          # hidden activation (f32)
            + tm * d_pad * 4)         # epilogue f32 temporaries


def _tiled_vmem_bytes(tm, d_pad, th):
    """VMEM working set of the H-tiled fallback path."""
    return (2 * tm * d_pad * 4        # x tile (double-buffered)
            + 2 * tm * d_pad * 4      # out tile
            + 2 * d_pad * th * 2      # W1 slab (bf16, double-buffered)
            + 2 * th * d_pad * 2      # W2 slab
            + 2 * th * 4 + d_pad * 4  # biases
            + tm * d_pad * 4          # f32 accumulator scratch
            + tm * d_pad * 2          # hoisted bf16 x scratch
            + tm * th * 4)            # hidden activation (f32)


# ----------------------------- kernels --------------------------------------


def _residual_ff_resident_kernel(x_ref, w1_ref, b1_ref, w2_ref, b2_ref, o_ref):
    """out = GELU(x @ W1 + b1) @ W2 + b2 + x, full H resident in VMEM."""
    x = x_ref[...]                                               # (tm, D) f32
    h = jnp.dot(x.astype(jnp.bfloat16), w1_ref[...],
                preferred_element_type=jnp.float32)              # (tm, H) f32
    # Bias add in f32; GELU and the second MXU operand in bf16 (bf16 EUP/VPU
    # on v6e/v7x — the bf16 cast was needed for the MXU anyway).
    # TODO(synk): jax.nn.gelu uses the tanh approximation; PyTorch nn.GELU
    # defaults to exact erf (deviation is tiny and within the test tolerance).
    h = jax.nn.gelu((h + b1_ref[...]).astype(jnp.bfloat16)).astype(jnp.bfloat16)
    y = jnp.dot(h, w2_ref[...], preferred_element_type=jnp.float32)
    # Fused epilogue: second bias + the Residual module's "+ x".
    o_ref[...] = (y + b2_ref[...] + x).astype(o_ref.dtype)


def _residual_ff_tiled_kernel(x_ref, w1_ref, b1_ref, w2_ref, b2_ref, o_ref,
                              acc_ref, xbf_ref):
    """Fallback: H is a reduction grid axis with an f32 VMEM accumulator."""
    j = pl.program_id(1)

    @pl.when(j == 0)
    def _init():
        acc_ref[...] = jnp.zeros_like(acc_ref)
        xbf_ref[...] = x_ref[...].astype(jnp.bfloat16)   # hoisted bf16 cast

    h = jnp.dot(xbf_ref[...], w1_ref[...],
                preferred_element_type=jnp.float32)              # (tm, th)
    h = jax.nn.gelu((h + b1_ref[...]).astype(jnp.bfloat16)).astype(jnp.bfloat16)
    acc_ref[...] += jnp.dot(h, w2_ref[...],
                            preferred_element_type=jnp.float32)  # (tm, D)

    @pl.when(j == pl.num_programs(1) - 1)
    def _finalize():
        # Fused epilogue: second bias + the Residual module's "+ x".
        o_ref[...] = (acc_ref[...] + b2_ref[...] + x_ref[...]).astype(o_ref.dtype)


# -------------------- one-time parameter preparation ------------------------


def prepare_residual_ff_params(w1, b1, w2, b2, *, h_tile=512, force_tiled=False):
    """One-time pad + bf16 cast of the FeedForward parameters.

    Hoisted out of the per-call path so step loops don't pay a full HBM
    read+write pass over the weights on every call.
    """
    D, H = w1.shape
    d_pad = _round_up(D, LANE)
    budget = _vmem_capacity_bytes() - (8 << 20)

    # Resident-weights fast path whenever bf16 W1+W2 plus a modest (128-row)
    # working set fit VMEM; otherwise fall back to H-tiling.
    h_res = _round_up(H, LANE)
    resident = (not force_tiled) and (_resident_vmem_bytes(128, d_pad, h_res)
                                      <= budget)

    if resident:
        h_pad, th = h_res, h_res
    else:
        # Pad H up to the reduction tile instead of degrading th to 128.
        th = min(h_tile, _round_up(H, LANE))
        h_pad = _round_up(H, th)

    # Zero-padding keeps semantics exact: padded W rows/cols and biases are 0,
    # GELU(0) = 0, so padded lanes contribute nothing and are sliced off later.
    w1p = jnp.pad(w1, ((0, d_pad - D), (0, h_pad - H))).astype(jnp.bfloat16)
    b1p = jnp.pad(b1, (0, h_pad - H)).reshape(1, h_pad).astype(jnp.float32)
    w2p = jnp.pad(w2, ((0, h_pad - H), (0, d_pad - D))).astype(jnp.bfloat16)
    b2p = jnp.pad(b2, (0, d_pad - D)).reshape(1, d_pad).astype(jnp.float32)

    return dict(w1=w1p, b1=b1p, w2=w2p, b2=b2p,
                D=D, H=H, d_pad=d_pad, h_pad=h_pad, th=th, resident=resident)


# ------------------------------ forward call ---------------------------------


def residual_feedforward(x, params, *, row_tile=512):
    """Residual(FeedForward): fn(x) + x, fully fused in one Pallas TPU kernel.

    x: [B, S, D]; params from prepare_residual_ff_params.
    """
    B, S, D = x.shape
    assert D == params["D"], "feature dim mismatch"
    d_pad, h_pad, th = params["d_pad"], params["h_pad"], params["th"]
    resident = params["resident"]
    rows = B * S
    itemsize = jnp.dtype(x.dtype).itemsize
    cap = _vmem_capacity_bytes()
    budget = cap - (8 << 20)

    # Row tile: keep >= 2 tiles whenever possible so the "parallel" row axis
    # actually feeds both v7x TensorCores; shrink the tile for small inputs
    # instead of padding everything into one tile.
    if rows <= row_tile:
        tm = max(SUBLANE, _round_up((rows + 1) // 2, SUBLANE))
    else:
        tm = row_tile
    vmem_fn = ((lambda t: _resident_vmem_bytes(t, d_pad, h_pad)) if resident
               else (lambda t: _tiled_vmem_bytes(t, d_pad, th)))
    while tm > SUBLANE and vmem_fn(tm) > budget:
        tm = max(SUBLANE, _round_up(tm // 2, SUBLANE))
    rows_pad = _round_up(rows, tm)
    n_row_tiles = rows_pad // tm

    # Pad x only when actually needed (lane-dense D, row-tile-aligned rows).
    x2 = x.reshape(rows, D)
    if rows_pad != rows or d_pad != D:
        x2 = jnp.pad(x2, ((0, rows_pad - rows), (0, d_pad - D)))

    vmem_needed = vmem_fn(tm)
    vmem_limit = max(16 << 20,
                     min(int(vmem_needed * 1.3) + (4 << 20), cap - (4 << 20)))

    weight_bytes = 2 * d_pad * h_pad * 2 + (h_pad + d_pad) * 4
    cost = pl.CostEstimate(
        flops=4 * rows_pad * d_pad * h_pad,              # two matmuls
        transcendentals=rows_pad * h_pad,                # GELU
        bytes_accessed=(rows_pad * d_pad * itemsize * 2  # x in + out
                        + weight_bytes * (1 if resident else n_row_tiles)),
    )

    if resident:
        grid = (n_row_tiles,)
        const = lambda i: (0, 0)
        in_specs = [
            pl.BlockSpec((tm, d_pad), lambda i: (i, 0)),                  # x
            pl.BlockSpec((d_pad, h_pad), const, pipeline_mode=pl.Buffered(1)),
            pl.BlockSpec((1, h_pad), const, pipeline_mode=pl.Buffered(1)),
            pl.BlockSpec((h_pad, d_pad), const, pipeline_mode=pl.Buffered(1)),
            pl.BlockSpec((1, d_pad), const, pipeline_mode=pl.Buffered(1)),
        ]
        out_specs = pl.BlockSpec((tm, d_pad), lambda i: (i, 0))
        scratch = []
        dims = ("parallel",)
        kernel = _residual_ff_resident_kernel
    else:
        grid = (n_row_tiles, h_pad // th)
        in_specs = [
            pl.BlockSpec((tm, d_pad), lambda i, j: (i, 0)),               # x
            pl.BlockSpec((d_pad, th), lambda i, j: (0, j)),               # W1
            pl.BlockSpec((1, th), lambda i, j: (0, j)),                   # b1
            pl.BlockSpec((th, d_pad), lambda i, j: (j, 0)),               # W2
            pl.BlockSpec((1, d_pad), lambda i, j: (0, 0),
                         pipeline_mode=pl.Buffered(1)),                   # b2
        ]
        out_specs = pl.BlockSpec((tm, d_pad), lambda i, j: (i, 0))
        scratch = [pltpu.VMEM((tm, d_pad), jnp.float32),    # f32 accumulator
                   pltpu.VMEM((tm, d_pad), jnp.bfloat16)]   # hoisted bf16 x
        dims = ("parallel", "arbitrary")
        kernel = _residual_ff_tiled_kernel

    out2 = pl.pallas_call(
        kernel,
        out_shape=jax.ShapeDtypeStruct((rows_pad, d_pad), x.dtype),
        grid_spec=pltpu.PrefetchScalarGridSpec(
            num_scalar_prefetch=0,
            grid=grid,
            in_specs=in_specs,
            out_specs=out_specs,
            scratch_shapes=scratch,
        ),
        compiler_params=pltpu.CompilerParams(
            dimension_semantics=dims,
            vmem_limit_bytes=vmem_limit,
        ),
        cost_estimate=cost,
    )(x2, params["w1"], params["b1"], params["w2"], params["b2"])

    return out2[:rows, :D].reshape(B, S, D)


def _reference(x, w1, b1, w2, b2):
    """Pure-JAX f32 reference for Residual(FeedForward): fn(x) + x."""
    h = jax.nn.gelu(jnp.einsum("bsd,dh->bsh", x, w1) + b1)
    y = jnp.einsum("bsh,hd->bsd", h, w2) + b2
    return y + x


if __name__ == "__main__":
    key = jax.random.PRNGKey(0)
    B, S, D, H = 2, 8, 32, 64

    k_x, k_w1, k_b1, k_w2, k_b2 = jax.random.split(key, 5)
    x = jax.random.normal(k_x, (B, S, D), dtype=jnp.float32)
    # Deterministic synthetic parameters (shapes of a Linear(D,H)/Linear(H,D) fn)
    w1 = jax.random.normal(k_w1, (D, H), dtype=jnp.float32) * 0.05
    b1 = jax.random.normal(k_b1, (H,), dtype=jnp.float32) * 0.05
    w2 = jax.random.normal(k_w2, (H, D), dtype=jnp.float32) * 0.05
    b2 = jax.random.normal(k_b2, (D,), dtype=jnp.float32) * 0.05

    ref = _reference(x, w1, b1, w2, b2)

    # Fast path: resident weights (the common case for MSA-sized FFNs).
    params = prepare_residual_ff_params(w1, b1, w2, b2)
    out = jax.block_until_ready(residual_feedforward(x, params))
    assert out.shape == x.shape and out.dtype == x.dtype
    # bf16 MXU/GELU operands (f32 accumulation) -> looser tolerance vs f32 ref.
    assert jnp.allclose(out, ref, atol=2e-2, rtol=2e-2), "resident path mismatch"

    # Fallback path: H-tiled reduction (forced here for coverage).
    params_t = prepare_residual_ff_params(w1, b1, w2, b2, force_tiled=True)
    out_t = jax.block_until_ready(residual_feedforward(x, params_t))
    assert jnp.allclose(out_t, ref, atol=2e-2, rtol=2e-2), "tiled path mismatch"

    print("KERNEL_OK")
</pallas_src>

<mosaic_0001>
module attributes {stable_mosaic.version = 11 : i64} {
  func.func @_residual_ff_resident_kernel(%arg0: i32, %arg1: memref<8x128xf32, #tpu.memory_space<vmem>>, %arg2: memref<128x128xbf16, #tpu.memory_space<vmem>>, %arg3: memref<1x128xf32, #tpu.memory_space<vmem>>, %arg4: memref<128x128xbf16, #tpu.memory_space<vmem>>, %arg5: memref<1x128xf32, #tpu.memory_space<vmem>>, %arg6: memref<8x128xf32, #tpu.memory_space<vmem>>) attributes {dimension_semantics = [#tpu.dimension_semantics<parallel>], iteration_bounds = array<i64: 2>, scalar_prefetch = 0 : i64, scratch_operands = 0 : i64, tpu.core_type = #tpu.core_type<tc>, window_params = [{transform_indices = @transform_0, window_bounds = array<i64: 8, 128>}, {pipeline_mode = #tpu.pipeline_mode<synchronous>, transform_indices = @transform_1, window_bounds = array<i64: 128, 128>}, {pipeline_mode = #tpu.pipeline_mode<synchronous>, transform_indices = @transform_2, window_bounds = array<i64: 1, 128>}, {pipeline_mode = #tpu.pipeline_mode<synchronous>, transform_indices = @transform_3, window_bounds = array<i64: 128, 128>}, {pipeline_mode = #tpu.pipeline_mode<synchronous>, transform_indices = @transform_4, window_bounds = array<i64: 1, 128>}, {transform_indices = @transform_5, window_bounds = array<i64: 8, 128>}]} {
    %c0 = arith.constant 0 : index
    %c0_0 = arith.constant 0 : index
    %0 = vector.load %arg1[%c0, %c0_0] : memref<8x128xf32, #tpu.memory_space<vmem>>, vector<8x128xf32>
    %1 = arith.truncf %0 : vector<8x128xf32> to vector<8x128xbf16>
    %c0_1 = arith.constant 0 : index
    %c0_2 = arith.constant 0 : index
    %2 = vector.load %arg2[%c0_1, %c0_2] : memref<128x128xbf16, #tpu.memory_space<vmem>>, vector<128x128xbf16>
    %cst = arith.constant dense<0.000000e+00> : vector<8x128xf32>
    %3 = tpu.matmul %1, %2, %cst {dimension_numbers = #tpu.dot_dimension_numbers<[1], [0], [0], [1], [0, 0, 1, 1], [], []>} : vector<8x128xbf16>, vector<128x128xbf16>, vector<8x128xf32> -> vector<8x128xf32>
    %c0_3 = arith.constant 0 : index
    %c0_4 = arith.constant 0 : index
    %4 = vector.load %arg3[%c0_3, %c0_4] : memref<1x128xf32, #tpu.memory_space<vmem>>, vector<1x128xf32>
    %5 = vector.broadcast %4 : vector<1x128xf32> to vector<8x128xf32>
    %6 = arith.addf %3, %5 : vector<8x128xf32>
    %7 = arith.truncf %6 : vector<8x128xf32> to vector<8x128xbf16>
    %8 = arith.mulf %7, %7 : vector<8x128xbf16>
    %9 = arith.mulf %7, %8 : vector<8x128xbf16>
    %cst_5 = arith.constant 4.467770e-02 : bf16
    %10 = vector.broadcast %cst_5 : bf16 to vector<8x128xbf16>
    %11 = arith.mulf %10, %9 : vector<8x128xbf16>
    %12 = arith.addf %7, %11 : vector<8x128xbf16>
    %cst_6 = arith.constant 7.968750e-01 : bf16
    %13 = vector.broadcast %cst_6 : bf16 to vector<8x128xbf16>
    %14 = arith.mulf %13, %12 : vector<8x128xbf16>
    %15 = math.tanh %14 : vector<8x128xbf16>
    %cst_7 = arith.constant 1.000000e+00 : bf16
    %16 = vector.broadcast %cst_7 : bf16 to vector<8x128xbf16>
    %17 = arith.addf %16, %15 : vector<8x128xbf16>
    %cst_8 = arith.constant 5.000000e-01 : bf16
    %18 = vector.broadcast %cst_8 : bf16 to vector<8x128xbf16>
    %19 = arith.mulf %18, %17 : vector<8x128xbf16>
    %20 = arith.mulf %7, %19 : vector<8x128xbf16>
    %c0_9 = arith.constant 0 : index
    %c0_10 = arith.constant 0 : index
    %21 = vector.load %arg4[%c0_9, %c0_10] : memref<128x128xbf16, #tpu.memory_space<vmem>>, vector<128x128xbf16>
    %cst_11 = arith.constant dense<0.000000e+00> : vector<8x128xf32>
    %22 = tpu.matmul %20, %21, %cst_11 {dimension_numbers = #tpu.dot_dimension_numbers<[1], [0], [0], [1], [0, 0, 1, 1], [], []>} : vector<8x128xbf16>, vector<128x128xbf16>, vector<8x128xf32> -> vector<8x128xf32>
    %c0_12 = arith.constant 0 : index
    %c0_13 = arith.constant 0 : index
    %23 = vector.load %arg5[%c0_12, %c0_13] : memref<1x128xf32, #tpu.memory_space<vmem>>, vector<1x128xf32>
    %24 = vector.broadcast %23 : vector<1x128xf32> to vector<8x128xf32>
    %25 = arith.addf %22, %24 : vector<8x128xf32>
    %26 = arith.addf %25, %0 : vector<8x128xf32>
    %c0_14 = arith.constant 0 : index
    %c0_15 = arith.constant 0 : index
    %27 = vector.load %arg6[%c0_14, %c0_15] : memref<8x128xf32, #tpu.memory_space<vmem>>, vector<8x128xf32>
    tpu.vector_store %arg6[%c0_14, %c0_15], %26 {strides = array<i32>} : memref<8x128xf32, #tpu.memory_space<vmem>>, vector<8x128xf32>,
    return
  }
  func.func @transform_0(%arg0: i32) -> (i32, i32) {
    %c0_i32 = arith.constant 0 : i32
    %c0_i32_0 = arith.constant 0 : i32
    return %arg0, %c0_i32 : i32, i32
  }
  func.func @transform_1(%arg0: i32) -> (i32, i32) {
    %c0_i32 = arith.constant 0 : i32
    %c0_i32_0 = arith.constant 0 : i32
    %c0_i32_1 = arith.constant 0 : i32
    return %c0_i32, %c0_i32_0 : i32, i32
  }
  func.func @transform_2(%arg0: i32) -> (i32, i32) {
    %c0_i32 = arith.constant 0 : i32
    %c0_i32_0 = arith.constant 0 : i32
    %c0_i32_1 = arith.constant 0 : i32
    return %c0_i32, %c0_i32_0 : i32, i32
  }
  func.func @transform_3(%arg0: i32) -> (i32, i32) {
    %c0_i32 = arith.constant 0 : i32
    %c0_i32_0 = arith.constant 0 : i32
    %c0_i32_1 = arith.constant 0 : i32
    return %c0_i32, %c0_i32_0 : i32, i32
  }
  func.func @transform_4(%arg0: i32) -> (i32, i32) {
    %c0_i32 = arith.constant 0 : i32
    %c0_i32_0 = arith.constant 0 : i32
    %c0_i32_1 = arith.constant 0 : i32
    return %c0_i32, %c0_i32_0 : i32, i32
  }
  func.func @transform_5(%arg0: i32) -> (i32, i32) {
    %c0_i32 = arith.constant 0 : i32
    %c0_i32_0 = arith.constant 0 : i32
    return %arg0, %c0_i32 : i32, i32
  }
}

</mosaic_0001>

<bundles_post_ra>
// kernel: tpu_custom_call.1
= control target key start
LH: loop header
LB: loop body
LE: loop exit
PB: predicated region body
PF: predicated region fallthrough
CT: control target
= control target key end

     0   :  { %10 = vsyncpa [#allocation3], 0  ;;  %s1232_s0 = inlined_call_operand.hbm [shape: f32[16,128], index: 0, kind: input, shape index: {}]   ;;  %s1233_s1 = inlined_call_operand.hbm [shape: bf16[128,128], index: 1, kind: input, shape index: {}]   ;;  %s1234_s2 = inlined_call_operand.vmem [shape: f32[1,128], index: 2, kind: input, shape index: {}]   ;;  %s1235_s3 = inlined_call_operand.hbm [shape: bf16[128,128], index: 3, kind: input, shape index: {}]   ;;  %s1236_s4 = inlined_call_operand.vmem [shape: f32[1,128], index: 4, kind: input, shape index: {}]   ;;  %s1237_s5 = inlined_call_operand.hbm [shape: f32[16,128], index: 5, kind: output, shape index: {}]  }
   0x1   :  { %12 = vsyncpa [#allocation3 + $0x1], 0 }
   0x2   :  { %13 = vsyncpa [#allocation6], 0 }
   0x3   :  { %14 = vsyncpa [#allocation4], 0 }
   0x4   :  { %16 = vsyncpa [#allocation4 + $0x1], 0  ;;  %s990_s18 = smov 0   ;;  %s992_s19 = smov 0  }
   0x5   :  { %s994_s20 = smov 0   ;;  %s996_s21 = smov 0  }
   0x6 LB: > { %s1011_s22 = sadd.s32 4294967295, %s950_s21   ;;  %s613_s23 = sadd.s32 4294967294, %s950_s21   ;;  %s950_s21 = sphi %s996_s21, %s1257_s21   ;;  %s946_s20 = sphi %s994_s20, %s1256_s20   ;;  %s942_s19 = sphi %s992_s19, %s1255_s19   ;;  %s938_s18 = sphi %s990_s18, %s1254_s18  }
   0x7   : > { %p42_p0 = scmp.ne.s32.totalorder %s942_s19, %s938_s18  ;;  %p1238_p1 = scmp.eq.s32.totalorder %s1011_s22, 0 }
   0x8   : > { %p156_p3 = scmp.eq.s32.totalorder %s613_s23, 1  ;;  %p614_p5 = scmp.ge.s32.totalorder %s950_s21, 1 }
   0x9   : > { %p1020_p4 = por %p1238_p1, %p42_p0  ;;  %p163_p7 = scmp.lt.s32.totalorder %s950_s21, 3 }
   0xa   : > { %p1025_p6 = por %p156_p3, %p42_p0  ;;  %s952_s27 = smov [#allocation5]  }
   0xb   : > { %s1241_s24 = scalar_select %p1020_p4, 1, 0 }
   0xc   : > { %s1242_s25 = scalar_select %p1025_p6, 1, 0 }
   0xd   : > { %p1030_p8 = pnand %p614_p5, %p163_p7  ;;  %s175_s28 = sshll.u32 %s952_s27, 4  ;;  %s1034_s28 = int_to_ptr.vmem [resolvable:$true] %s175_s28 }
   0xe   : > { %s953_s30 = smov [#allocation7]   ;;  %s794_s9 = scalar_lea.hbm %s1233_s1, 1024 }
   0xf   : > { %p717_p9 = pneg %p1030_p8  ;;  %s191_s6 = sshll.u32 %s953_s30, 4  ;;  %s1045_s6 = int_to_ptr.vmem [resolvable:$true] %s191_s6 }
  0x10   : > { %p795_p12 = scmp.ne.s32.totalorder %s1233_s1, %s794_s9  ;;  %p801_p5 = scmp.lt.u32.totalorder %s794_s9, %s1233_s1 }
  0x11   : > { %p1041_p11 = pnand %p717_p9, %p1238_p1 }
  0x13   : > { %p796_p13 = pneg %p1041_p11 }
  0x15   : > { %p797_p0 = pnand %p796_p13, %p795_p12 }
  0x17   : > { %p798_p3 = pneg %p797_p0 }
  0x19   : > { %p803_p7 = pnand %p801_p5, %p798_p3 }
  0x1b   : > { %806 = shalt.err (!%p803_p7)
}
  0x1c   : > { %s807_s14 = scalar_lea.vmem %s1034_s28, 1024  ;;  %p815_p2 = scmp.lt.s32.totalorder %s1034_s28, %s1034_s28 }
  0x1d   : > { %p808_p9 = scmp.ne.s32.totalorder %s1034_s28, %s807_s14  ;;  %p816_p12 = scmp.lt.s32.totalorder %s807_s14, %s807_s14 }
  0x1f   : > { %p810_p10 = pnand %p808_p9, %p796_p13  ;;  %p817_p0 = por %p816_p12, %p815_p2 }
  0x21   : > { %p811_p1 = pneg %p810_p10 }
  0x23   : > { %p818_p6 = pnand %p817_p0, %p811_p1 }
  0x25   : > { %821 = shalt.err (!%p818_p6)
}
  0x26   : > { %s954_s15 = smov 64   ;;  %s955_s16 = smov 4  }
  0x27   : > { %720 = dma.hbm_to_vmem [thread:$0]  (!%p1041_p11), %s1233_s1, 1024, %s1034_s28, [#allocation6], %s954_s15, %s954_s15, %s955_s16  }
  0x28   : > { %s822_s7 = scalar_lea.hbm %s1235_s3, 1024 }
  0x29   : > { %p823_p2 = scmp.ne.s32.totalorder %s1235_s3, %s822_s7  ;;  %p829_p10 = scmp.lt.u32.totalorder %s822_s7, %s1235_s3 }
  0x2b   : > { %p825_p1 = pnand %p823_p2, %p796_p13 }
  0x2d   : > { %p826_p6 = pneg %p825_p1 }
  0x2f   : > { %p831_p3 = pnand %p829_p10, %p826_p6 }
  0x31   : > { %834 = shalt.err (!%p831_p3)
}
  0x32   : > { %s835_s28 = scalar_lea.vmem %s1045_s6, 1024  ;;  %p843_p12 = scmp.lt.s32.totalorder %s1045_s6, %s1045_s6 }
  0x33   : > { %p836_p5 = scmp.ne.s32.totalorder %s1045_s6, %s835_s28  ;;  %p844_p0 = scmp.lt.s32.totalorder %s835_s28, %s835_s28 }
  0x35   : > { %p838_p7 = pnand %p836_p5, %p796_p13  ;;  %p845_p2 = por %p844_p0, %p843_p12 }
  0x37   : > { %p839_p9 = pneg %p838_p7 }
  0x39   : > { %p846_p1 = pnand %p845_p2, %p839_p9 }
  0x3b   : > { %849 = shalt.err (!%p846_p1)
}
  0x3c   : > { %723 = dma.hbm_to_vmem [thread:$0]  (!%p1041_p11), %s1235_s3, 1024, %s1045_s6, [#allocation6], %s954_s15, %s954_s15, %s955_s16  }
  0x3d   : > { %s1100_s14 = sadd.s32 1, %s950_s21   ;;  %s29_s29 = sadd.s32 1, %s946_s20 }
  0x3e   : > { %s26_s17 = ssub.s32 %s950_s21, %s1100_s14  ;;  %p36_p13 = scmp.ne.s32.totalorder %s946_s20, %s942_s19 }
  0x3f   : > { %p27_p6 = scmp.eq.s32.totalorder %s26_s17, 0  ;;  %p37_p10 = scmp.eq.s32.totalorder %s950_s21, 0 }
  0x40   : > { %p1245_p3 = scmp.eq.s32.totalorder %s1011_s22, 1  ;;  %p734_p7 = scmp.lt.s32.totalorder %s950_s21, 2 }
  0x41   : > { %s1116_s27 = scalar_select %p27_p6, %s946_s20, %s29_s29  }
  0x42   : > { %p1110_p5 = por %p1245_p3, %p36_p13  ;;  %p38_p9 = por %p37_p10, %p36_p13 }
  0x43   : > { %s208_s30 = sand.u32 1, %s946_s20   ;;  %s619_s6 = sshll.u32 %s950_s21, 7 }
  0x44   : > { %s1246_s23 = scalar_select %p1110_p5, 1, 0 }
  0x45   : > { %s618_s7 = sshll.u32 %s208_s30, 3  ;;  %s1123_s8 = scalar_lea.hbm %s1232_s0, %s619_s6 }
  0x46   : > { %s212_s9 = scalar_lea.vmem [#allocation2], %s618_s7  ;;  %p1127_p11 = pnand %p734_p7, %p38_p9 }
  0x47   : > { %s219_s10 = sshll.u32 %s212_s9, 4  ;;  %s209_s28 = scalar_lea.sflag [#allocation3], %s208_s30  ;;  %s1125_s10 = int_to_ptr.vmem [resolvable:$true] %s219_s10 }
  0x48   : > { %s850_s12 = scalar_lea.hbm %s1123_s8, 128  ;;  %p852_p0 = pneg %p1127_p11 }
  0x49   : > { %p851_p12 = scmp.ne.s32.totalorder %s1123_s8, %s850_s12  ;;  %s855_s17 = scalar_lea.hbm %s1232_s0, 256 }
  0x4a   : > { %p856_p13 = scmp.lt.u32.totalorder %s1123_s8, %s1232_s0  ;;  %p857_p6 = scmp.lt.u32.totalorder %s855_s17, %s850_s12 }
  0x4b   : > { %p853_p2 = pnand %p852_p0, %p851_p12  ;;  %p859_p3 = scmp.lt.u32.totalorder %s850_s12, %s1123_s8 }
  0x4c   : > { %p858_p10 = por %p857_p6, %p856_p13 }
  0x4d   : > { %p854_p1 = pneg %p853_p2 }
  0x4e   : > { %p860_p7 = por %p859_p3, %p858_p10 }
  0x50   : > { %p861_p9 = pnand %p860_p7, %p854_p1 }
  0x52   : > { %864 = shalt.err (!%p861_p9)
}
  0x53   : > { %s865_s30 = scalar_lea.vmem %s1125_s10, 128  ;;  %s956_s15 = smov [#allocation2]  }
  0x54   : > { %p866_p12 = scmp.ne.s32.totalorder %s1125_s10, %s865_s30  ;;  %s870_s16 = sshll.u32 %s956_s15, 4  ;;  %s871_s16 = int_to_ptr.vmem [resolvable:$false] %s870_s16 }
  0x55   : > { %s872_s9 = scalar_lea.vmem %s871_s16, 256  ;;  %p873_p4 = scmp.lt.s32.totalorder %s1125_s10, %s871_s16 }
  0x56   : > { %p868_p2 = pnand %p866_p12, %p852_p0  ;;  %p874_p13 = scmp.lt.s32.totalorder %s872_s9, %s865_s30 }
  0x58   : > { %p869_p5 = pneg %p868_p2  ;;  %p875_p6 = por %p874_p13, %p873_p4 }
  0x5a   : > { %p876_p10 = pnand %p875_p6, %p869_p5 }
  0x5c   : > { %879 = shalt.err (!%p876_p10)
}
  0x5d   : > { %727 = dma.hbm_to_vmem [thread:$0]  (!%p1127_p11), %s1123_s8, 128, %s1125_s10, %s209_s28  }
  0x5e   : > { %228 = sbr.rel (%p1030_p8) target bundleno = 613 (0x265), region = 40  ;;  %s1159_s12 = sand.u32 (!%p1030_p8), 1, %s942_s19  }
  0x5f   : > { %s621_s13 = sshll.u32 (!%p1030_p8), %s1159_s12, 3  ;;  %s231_s29 = scalar_lea.sflag (!%p1030_p8), [#allocation3], %s1159_s12 }
  0x60   : > { %s1165_s17 = scalar_lea.vmem (!%p1030_p8), [#allocation2], %s621_s13  ;;  %p1248_p4 = scmp.ne.s32.totalorder (!%p1030_p8), %s1241_s24, 0 }
  0x65   : > { %925 = dma.done.wait (%p1248_p4), %s231_s29, 128  }
  0x66   : > { %927 = vsyncadd (%p1248_p4), %s231_s29, 4294967168  ;;  %p1249_p5 = scmp.eq.s32.totalorder %s1011_s22, 0 }
  0x68   : > { %929 = dma.done.wait (%p1249_p5), [#allocation6], 2048   ;;  %p1250_p8 = pmov %p1249_p5 }
  0x69   : > { %v957_v0 = vmov 0.0   ;;  %vm958_vm0 = vmmov 0   ;;  %v776_v1 = vld [vmem:[#allocation5] sm:$0xff]   ;;  %v777_v2 = vld [vmem:[#allocation5 + $0x8] sm:$0xff]   ;;  %v778_v3 = vld [vmem:[#allocation5 + $0x10] sm:$0xff]   ;;  %s644_s11 = sshll.u32 %s1011_s22, 7 }
  0x6a   : > { %931 = vsyncadd (%p1250_p8), [#allocation6], 4294965248  ;;  %665 = vmatprep.subr.bf16.mxu0 %v957_v0  ;;  %681 = vmatprep.mubr.msk.bf16.mxu0 %vm958_vm0, %v957_v0  ;;  %v779_v4 = vld [vmem:[#allocation5 + $0x18] sm:$0xff]   ;;  %v780_v5 = vld [vmem:[#allocation5 + $0x20] sm:$0xff]   ;;  %s268_s28 = scalar_lea.vmem [#allocation8], %s621_s13  ;;  %s1188_s15 = scalar_lea.hbm %s1237_s5, %s644_s11 }
  0x6b   : > { %685 = vmatprep.subr.bf16.mxu1 %v957_v0  ;;  %701 = vmatprep.mubr.msk.bf16.mxu1 %vm958_vm0, %v957_v0  ;;  %v781_v6 = vld [vmem:[#allocation5 + $0x28] sm:$0xff]   ;;  %v782_v7 = vld [vmem:[#allocation5 + $0x30] sm:$0xff]   ;;  %v783_v8 = vld [vmem:[#allocation5 + $0x38] sm:$0xff]   ;;  %s524_s7 = sshll.u32 %s268_s28, 4  ;;  %s511_s22 = scalar_lea.sflag [#allocation4], %s1159_s12  ;;  %s1190_s7 = int_to_ptr.vmem [resolvable:$true] %s524_s7 }
  0x6c   : > { %666 = vmatpush3.bf16.msra.mxu0 %v776_v1  ;;  %v274_v9 = vld [vmem:[%s1165_s17] sm:$0xff]  ;;  %v784_v11 = vld [vmem:[#allocation7] sm:$0xff]   ;;  %v785_v12 = vld [vmem:[#allocation7 + $0x8] sm:$0xff]   ;;  %s880_s16 = scalar_lea.vmem %s1190_s7, 128  ;;  %p1251_p0 = scmp.ne.s32.totalorder %s1246_s23, 0 }
  0x6d   : > { %667 = vmatprep.subr.bf16.mxu0 %v957_v0  ;;  %v275_v10 = vpack.c.bf16 %v274_v9, %v274_v9  ;;  %686 = vmatpush3.bf16.msra.mxu1 %v784_v11  ;;  %v786_v13 = vld [vmem:[#allocation7 + $0x10] sm:$0xff]   ;;  %v787_v14 = vld [vmem:[#allocation7 + $0x18] sm:$0xff]   ;;  %v788_v15 = vld [vmem:[#allocation7 + $0x20] sm:$0xff]   ;;  %p881_p11 = scmp.ne.s32.totalorder %s1190_s7, %s880_s16  ;;  %s959_s9 = smov [#allocation8]  }
  0x6e   : > { %687 = vmatprep.subr.bf16.mxu1 %v957_v0  ;;  %v789_v16 = vld [vmem:[#allocation7 + $0x28] sm:$0xff]   ;;  %v790_v17 = vld [vmem:[#allocation7 + $0x30] sm:$0xff]   ;;  %v791_v18 = vld [vmem:[#allocation7 + $0x38] sm:$0xff]   ;;  %s884_s13 = sshll.u32 %s959_s9, 4  ;;  %s885_s13 = int_to_ptr.vmem [resolvable:$false] %s884_s13 }
  0x6f   : > { %v625_v19 = vld [vmem:[%s1234_s2] ss:$0 sm:$0xff]  ;;  %p882_p1 = pnand %p881_p11, %p1251_p0  ;;  %s886_s29 = scalar_lea.vmem %s885_s13, 256 }
  0x70   : > { %668 = vmatpush3.bf16.msra.mxu0 %v777_v2  ;;  %v634_v35 = vld [vmem:[%s1236_s4] ss:$0 sm:$0xff]  ;;  %p887_p7 = scmp.lt.s32.totalorder %s1190_s7, %s885_s13  ;;  %p888_p9 = scmp.lt.s32.totalorder %s886_s29, %s880_s16 }
  0x71   : > { %669 = vmatprep.subr.bf16.mxu0 %v957_v0  ;;  %688 = vmatpush3.bf16.msra.mxu1 %v785_v12  ;;  %p883_p3 = pneg %p882_p1 }
  0x72   : > { %689 = vmatprep.subr.bf16.mxu1 %v957_v0  ;;  %p889_p12 = por %p888_p9, %p887_p7 }
  0x74   : > { %670 = vmatpush3.bf16.msra.mxu0 %v778_v3  ;;  %p890_p2 = pnand %p889_p12, %p883_p3 }
  0x75   : > { %671 = vmatprep.subr.bf16.mxu0 %v957_v0  ;;  %690 = vmatpush3.bf16.msra.mxu1 %v786_v13 }
  0x76   : > { %691 = vmatprep.subr.bf16.mxu1 %v957_v0 }
  0x78   : > { %672 = vmatpush3.bf16.msra.mxu0 %v779_v4 }
  0x79   : > { %673 = vmatprep.subr.bf16.mxu0 %v957_v0  ;;  %692 = vmatpush3.bf16.msra.mxu1 %v787_v14 }
  0x7a   : > { %693 = vmatprep.subr.bf16.mxu1 %v957_v0 }
  0x7c   : > { %674 = vmatpush3.bf16.msra.mxu0 %v780_v5 }
  0x7d   : > { %675 = vmatprep.subr.bf16.mxu0 %v957_v0  ;;  %694 = vmatpush3.bf16.msra.mxu1 %v788_v15 }
  0x7e   : > { %695 = vmatprep.subr.bf16.mxu1 %v957_v0 }
  0x80   : > { %676 = vmatpush3.bf16.msra.mxu0 %v781_v6 }
  0x81   : > { %677 = vmatprep.subr.bf16.mxu0 %v957_v0  ;;  %696 = vmatpush3.bf16.msra.mxu1 %v789_v16 }
  0x82   : > { %697 = vmatprep.subr.bf16.mxu1 %v957_v0 }
  0x84   : > { %678 = vmatpush3.bf16.msra.mxu0 %v782_v7 }
  0x85   : > { %679 = vmatprep.subr.bf16.mxu0 %v957_v0  ;;  %698 = vmatpush3.bf16.msra.mxu1 %v790_v17 }
  0x86   : > { %699 = vmatprep.subr.bf16.mxu1 %v957_v0 }
  0x88   : > { %680 = vmatpush3.bf16.msra.mxu0 %v783_v8 }
  0x89   : > { %700 = vmatpush3.bf16.msra.mxu1 %v791_v18 }
  0x8b   : > { %682 = vmatmul.mubr.bf16.vlgmr.msra.gmra.mrb[0].mxu0 %v275_v10 }
 0x15e   : > { %v381_v20 = vpop.f32.mrb[0].mxu0 }
 0x15f   : > { %v382_v21 = vadd.f32 %v625_v19, %v381_v20  ;;  %v683_v22 = vpop.f32.mrb[1].mxu0 }
 0x160   : > { %v384_v23 = vpop.f32.mrb[2].mxu0 }
 0x161   : > { %v387_v24 = vpack.c.bf16 %v382_v21, %v382_v21  ;;  %v684_v25 = vpop.f32.mrb[3].mxu0 }
 0x163   : > { %v388_v26 = vmul.bf16 %v387_v24, %v387_v24 }
 0x165   : > { %v389_v27 = vmul.bf16 %v388_v26, %v387_v24 }
 0x167   : > { %v390_v28 = vmul.bf16 1027030327, %v389_v27 }
 0x169   : > { %v391_v29 = vadd.bf16 %v390_v28, %v387_v24 }
 0x16b   : > { %v392_v30 = vmul.bf16 1061961548, %v391_v29 }
 0x16d   : > { %792 = vtanh.bf16 %v392_v30 }
 0x178   : > { %v793_v31 = vpop.eup %792 }
 0x179   : > { %v394_v32 = vadd.bf16 1065369472, %v793_v31 }
 0x17b   : > { %v395_v33 = vmul.bf16 1056980736, %v394_v32 }
 0x17d   : > { %v396_v34 = vmul.bf16 %v395_v33, %v387_v24 }
 0x17f   : > { %702 = vmatmul.mubr.bf16.vlgmr.msra.gmra.mrb[0].mxu1 %v396_v34 }
 0x252   : > { %v502_v36 = vpop.f32.mrb[0].mxu1 }
 0x253   : > { %v503_v37 = vadd.f32 %v634_v35, %v502_v36  ;;  %v703_v38 = vpop.f32.mrb[1].mxu1 }
 0x254   : > { %v505_v39 = vpop.f32.mrb[2].mxu1 }
 0x255   : > { %v508_v40 = vadd.f32 %v503_v37, %v274_v9  ;;  %v704_v41 = vpop.f32.mrb[3].mxu1 }
 0x257   : > { %509 = vst [vmem:[%s268_s28] sm:$0xff] %v508_v40 }
 0x258   : > { %893 = shalt.err (!%p890_p2)
}
 0x259   : > { %s894_s12 = scalar_lea.hbm %s1188_s15, 128  ;;  %s898_s26 = scalar_lea.hbm %s1237_s5, 256 }
 0x25a   : > { %p895_p13 = scmp.ne.s32.totalorder %s1188_s15, %s894_s12  ;;  %p899_p4 = scmp.lt.u32.totalorder %s1188_s15, %s1237_s5 }
 0x25b   : > { %p900_p5 = scmp.lt.u32.totalorder %s898_s26, %s894_s12  ;;  %p902_p11 = scmp.lt.u32.totalorder %s894_s12, %s1188_s15 }
 0x25c   : > { %p896_p6 = pnand %p895_p13, %p1251_p0 }
 0x25d   : > { %p901_p8 = por %p900_p5, %p899_p4 }
 0x25e   : > { %p897_p10 = pneg %p896_p6 }
 0x25f   : > { %p903_p1 = por %p902_p11, %p901_p8 }
 0x261   : > { %p904_p3 = pnand %p903_p1, %p897_p10 }
 0x263   : > { %907 = shalt.err (!%p904_p3)
}
 0x264   : > { %715 = dma.vmem_to_hbm [thread:$0]  (%p1251_p0), %s1190_s7, 128, %s1188_s15, %s511_s22  }
 0x265 PF: > { %s536_s11 = sand.u32 1, %s938_s18   ;;  %p1252_p7 = scmp.ne.s32.totalorder %s1242_s25, 0 }
 0x266   : > { %p1253_p9 = scmp.ge.s32.totalorder %s950_s21, 2  ;;  %s537_s28 = scalar_lea.sflag [#allocation4], %s536_s11 }
 0x268   : > { %p729_p12 = pnand %p1253_p9, %p1252_p7 }
 0x26a   : > { %933 = dma.done.wait (!%p729_p12), %s537_s28, 128  }
 0x26b   : > { %935 = vsyncadd (!%p729_p12), %s537_s28, 4294967168  ;;  %p19_p2 = scmp.ge.s32.totalorder %s1100_s14, 4   ;;  %s1254_s18 = smov %s942_s19 }
 0x26c   : > { %s1255_s19 = smov %s946_s20  ;;  %s1256_s20 = smov %s1116_s27 }
 0x26d   : > { %s1257_s21 = smov %s1100_s14  ;;  %21 = sbr.rel (!%p19_p2) target bundleno = 6 (0x6), region = 93 }
 0x274   :  { %542 = vsyncpa [#allocation3], 1 }
 0x275   :  { %544 = vsyncpa [#allocation3 + $0x1], 1 }
 0x276   :  { %545 = vsyncpa [#allocation6], 1 }
 0x277   :  { %546 = vsyncpa [#allocation4], 1 }
 0x278   :  { %548 = vsyncpa [#allocation4 + $0x1], 1 }

</bundles_post_ra>
